<compile_context>
chip_gen: v5e
topology: v5e:2x2
jax: 0.10.0
libtpu: 0.0.40
codegen_flags: <defaults>
</compile_context>

<pallas_src>
import functools
import numpy as np
import jax
import jax.numpy as jnp
from jax.experimental import pallas as pl
from jax.experimental.pallas import tpu as pltpu


# Cap on the lane-packed block width Nb*Wp (bounds blockdiag(Dw) size and the
# q repack cost while still giving >=128-lane-dense tiles when batch allows).
LANE_PACK_MAX = 256


# ----------------------------------------------------------------------------
# Operator setup (host-side numpy, deterministic)
# ----------------------------------------------------------------------------
def make_lap_operators(C, H, W, pool=2):
    Hp, Wp = H // pool, W // pool
    Ph = np.zeros((Hp, H), np.float32)
    for i in range(Hp):
        Ph[i, pool * i:pool * (i + 1)] = 1.0 / pool
    Pw = np.zeros((W, Wp), np.float32)
    for j in range(Wp):
        Pw[pool * j:pool * (j + 1), j] = 1.0 / pool

    def second_diff(n):  # tridiag(-1, 2, -1): 1-D Laplacian, zero boundary
        D = 2.0 * np.eye(n, dtype=np.float32)
        for i in range(n - 1):
            D[i, i + 1] = -1.0
            D[i + 1, i] = -1.0
        return D

    PhE = np.tile(Ph, (1, C))  # (Hp, C*H): channel sum folded into the contraction
    return dict(PhE=PhE, Pw=Pw, Dh=second_diff(Hp), Dw=second_diff(Wp),
                C=C, H=H, W=W, Hp=Hp, Wp=Wp)


# ----------------------------------------------------------------------------
# Generation-aware sizing
# ----------------------------------------------------------------------------
@functools.lru_cache(maxsize=None)
def _vmem_budget():
    """(scoped vmem_limit_bytes, per-block input-byte budget) for this chip."""
    try:
        cap = int(pltpu.get_tpu_info().vmem_capacity_bytes)
    except Exception:
        cap = 64 << 20                                  # conservative (v7x-sized)
    vmem_limit = min((cap * 3) // 4, 96 << 20)          # 96 MiB on v5e/v6e, 48 MiB on v7x
    block_budget = max(4 << 20, vmem_limit // 4)        # 2x double-buffered x block + target
    return int(vmem_limit), int(block_budget)


def _compiler_params():
    vmem_limit, _ = _vmem_budget()
    return pltpu.CompilerParams(
        dimension_semantics=("parallel",),              # disjoint output block per step
        vmem_limit_bytes=vmem_limit,
    )


def _choose_nb(N, C, H, W, Wp):
    """Images per grid step and number of blocks (batch padded to nb*nblk)."""
    _, block_budget = _vmem_budget()
    per_image = C * H * W * 4
    nb = max(1, block_budget // per_image)              # VMEM budget on the x block
    nb = min(nb, max(1, LANE_PACK_MAX // Wp))           # lane-pack width cap
    if N >= 2:
        nb = min(nb, N // 2)                            # >=2 parallel steps (v7x dual TC)
    nb = max(1, min(nb, N))
    nblk = -(-N // nb)                                  # ceil; remainder handled by zero pad
    return nb, nblk


def _pack_inputs(x, nb, nblk):
    """(N,C,H,W) -> (nblk, nb*C*H, W), zero-padding the batch to nb*nblk."""
    N, C, H, W = x.shape
    x2 = x.reshape(N * C * H, W)
    pad = nblk * nb - N
    if pad:
        x2 = jnp.concatenate([x2, jnp.zeros((pad * C * H, W), x2.dtype)], axis=0)
    return x2.reshape(nblk, nb * C * H, W)


def _device_ops(ops, nb):
    # TODO(synk): optional bf16 cast of x / operators for v6e/v7x MXU throughput;
    # skipped here to hold the 1e-4 f32 tolerance (kernel is HBM-bound anyway).
    Dw = ops["Dw"]
    Dw_bd = np.kron(np.eye(nb, dtype=np.float32), Dw) if nb > 1 else Dw
    return (jnp.asarray(ops["Pw"]), jnp.asarray(ops["PhE"]),
            jnp.asarray(ops["Dh"]), jnp.asarray(Dw_bd))


def _full_spec(a):
    nd = a.ndim
    return pl.BlockSpec(a.shape, lambda i: (0,) * nd)


# ----------------------------------------------------------------------------
# Shared in-kernel block computation (lane-packed, 4 MXU matmuls per block)
# ----------------------------------------------------------------------------
def _edge_block(x2, pw, phe, dh, dw_bd, nb, ch):
    """Edge maps for nb row-packed images, lane-packed as one (Hp, nb*Wp) tile."""
    q = jnp.dot(x2, pw, preferred_element_type=jnp.float32)           # (nb*CH, Wp)
    if nb > 1:
        # Row-packed -> lane-packed repack of the small q intermediate:
        # static slices + a single minor-dim concatenate (no per-image matmuls).
        q = jnp.concatenate([q[n * ch:(n + 1) * ch, :] for n in range(nb)], axis=1)
    p = jnp.dot(phe, q, preferred_element_type=jnp.float32)           # (Hp, nb*Wp) pooled
    return (jnp.dot(dh, p, preferred_element_type=jnp.float32)
            + jnp.dot(p, dw_bd, preferred_element_type=jnp.float32))  # (Hp, nb*Wp)


# ----------------------------------------------------------------------------
# Pallas kernels
# ----------------------------------------------------------------------------
def _make_edge_kernel(nb, ch):
    def kernel(x_ref, pw_ref, phe_ref, dh_ref, dwbd_ref, out_ref):
        e = _edge_block(x_ref[0], pw_ref[...], phe_ref[...], dh_ref[...],
                        dwbd_ref[...], nb, ch)
        out_ref[0] = e.astype(out_ref.dtype)        # single full-block store
    return kernel


def _make_loss_kernel(nb, ch):
    def kernel(x_ref, pw_ref, phe_ref, dh_ref, dwbd_ref, tgt_ref, out_ref):
        e = _edge_block(x_ref[0], pw_ref[...], phe_ref[...], dh_ref[...],
                        dwbd_ref[...], nb, ch)
        d = e - tgt_ref[0]                          # one lane-dense diff (VPU)
        out_ref[0] = jnp.sum(d * d, keepdims=True)  # one reduce per block
    return kernel


# ----------------------------------------------------------------------------
# Wrappers
# ----------------------------------------------------------------------------
def edge_detect_packed(x, ops):
    """AvgPool2d(2)+Laplacian edge maps, lane-packed per block: (nblk, Hp, nb*Wp)."""
    N, C, H, W = x.shape
    Hp, Wp = ops["Hp"], ops["Wp"]
    CH = C * H
    nb, nblk = _choose_nb(N, C, H, W, Wp)
    x3 = _pack_inputs(x, nb, nblk)
    pw, phe, dh, dw_bd = _device_ops(ops, nb)
    return pl.pallas_call(
        _make_edge_kernel(nb, CH),
        out_shape=jax.ShapeDtypeStruct((nblk, Hp, nb * Wp), jnp.float32),
        grid_spec=pltpu.PrefetchScalarGridSpec(
            num_scalar_prefetch=0,
            grid=(nblk,),
            in_specs=[
                # (pipeline_mode=pl.Buffered(3) on this spec only if profiling
                #  shows exposed DMA at the chosen block size)
                pl.BlockSpec((1, nb * CH, W), lambda i: (i, 0, 0)),
                _full_spec(pw), _full_spec(phe), _full_spec(dh), _full_spec(dw_bd),
            ],
            out_specs=pl.BlockSpec((1, Hp, nb * Wp), lambda i: (i, 0, 0)),
        ),
        compiler_params=_compiler_params(),
    )(x3, pw, phe, dh, dw_bd)


def edge_detect(x, ops):
    """Edge maps in (N, Hp, Wp) layout (wrapper-side unpack of the packed slabs)."""
    N = x.shape[0]
    Hp, Wp = ops["Hp"], ops["Wp"]
    nb, nblk = _choose_nb(N, ops["C"], ops["H"], ops["W"], Wp)
    packed = edge_detect_packed(x, ops)                       # (nblk, Hp, nb*Wp)
    e = packed.reshape(nblk, Hp, nb, Wp).transpose(0, 2, 1, 3)
    return e.reshape(nblk * nb, Hp, Wp)[:N]


def lap_style_loss(x, target_packed, ops):
    """MSE(edge_detect(x), target) as per-block Pallas partial sums + tiny reduce."""
    N, C, H, W = x.shape
    Hp, Wp = ops["Hp"], ops["Wp"]
    CH = C * H
    nb, nblk = _choose_nb(N, C, H, W, Wp)
    assert target_packed.shape == (nblk, Hp, nb * Wp), "target/input layout mismatch"
    x3 = _pack_inputs(x, nb, nblk)
    pw, phe, dh, dw_bd = _device_ops(ops, nb)
    partials = pl.pallas_call(
        _make_loss_kernel(nb, CH),
        out_shape=jax.ShapeDtypeStruct((nblk, 1, 1), jnp.float32),
        grid_spec=pltpu.PrefetchScalarGridSpec(
            num_scalar_prefetch=0,
            grid=(nblk,),
            in_specs=[
                pl.BlockSpec((1, nb * CH, W), lambda i: (i, 0, 0)),
                _full_spec(pw), _full_spec(phe), _full_spec(dh), _full_spec(dw_bd),
                pl.BlockSpec((1, Hp, nb * Wp), lambda i: (i, 0, 0)),
            ],
            out_specs=pl.BlockSpec((1, 1, 1), lambda i: (i, 0, 0)),
        ),
        compiler_params=_compiler_params(),
    )(x3, pw, phe, dh, dw_bd, target_packed)
    # Padded (zero) images have zero edges AND zero target -> contribute 0.
    return jnp.sum(partials) / float(N * Hp * Wp)


# ----------------------------------------------------------------------------
# Pure-JAX reference (matches the PyTorch module semantics) for sanity check
# ----------------------------------------------------------------------------
def _ref_edge(v):
    p = jax.lax.reduce_window(v, 0.0, jax.lax.add,
                              (1, 1, 2, 2), (1, 1, 2, 2), "VALID") / 4.0
    lap = jnp.array([[0., -1., 0.], [-1., 4., -1.], [0., -1., 0.]], jnp.float32)
    w = jnp.broadcast_to(lap, (1, v.shape[1], 3, 3))
    return jax.lax.conv_general_dilated(
        p, w, window_strides=(1, 1), padding=((1, 1), (1, 1)),
        dimension_numbers=("NCHW", "OIHW", "NCHW"))


def _ref_loss(x, content):
    return jnp.mean((_ref_edge(x) - _ref_edge(content)) ** 2)


# ----------------------------------------------------------------------------
if __name__ == "__main__":
    N, C, H, W = 2, 3, 16, 16          # conv weight (1, 3, 3, 3) => C must be 3
    POOL = 2

    key = jax.random.PRNGKey(0)
    k_content, k_input = jax.random.split(key)
    content = jax.random.normal(k_content, (N, C, H, W), jnp.float32)
    x = jax.random.normal(k_input, (N, C, H, W), jnp.float32)

    ops = make_lap_operators(C, H, W, POOL)

    # __init__: target = edge_detector(content)   (Pallas kernel, packed layout)
    target_packed = jax.block_until_ready(edge_detect_packed(content, ops))

    # forward: mse_loss(edge_detector(x), target)  (Pallas kernel + tiny reduce)
    loss = jax.block_until_ready(lap_style_loss(x, target_packed, ops))

    # Sanity checks vs. pure-JAX reference of the PyTorch module
    ref_edges = jax.block_until_ready(_ref_edge(x))[:, 0]
    got_edges = jax.block_until_ready(edge_detect(x, ops))
    np.testing.assert_allclose(np.asarray(got_edges), np.asarray(ref_edges),
                               rtol=1e-4, atol=1e-4)

    ref = jax.block_until_ready(_ref_loss(x, content))
    np.testing.assert_allclose(np.asarray(loss), np.asarray(ref),
                               rtol=1e-4, atol=1e-4)

    print("KERNEL_OK")
</pallas_src>

<mosaic_0001>
module attributes {stable_mosaic.version = 11 : i64} {
  func.func @kernel(%arg0: i32, %arg1: memref<1x48x16xf32, #tpu.memory_space<vmem>>, %arg2: memref<16x8xf32, #tpu.memory_space<vmem>>, %arg3: memref<8x48xf32, #tpu.memory_space<vmem>>, %arg4: memref<8x8xf32, #tpu.memory_space<vmem>>, %arg5: memref<8x8xf32, #tpu.memory_space<vmem>>, %arg6: memref<1x8x8xf32, #tpu.memory_space<vmem>>) attributes {dimension_semantics = [#tpu.dimension_semantics<parallel>], iteration_bounds = array<i64: 2>, scalar_prefetch = 0 : i64, scratch_operands = 0 : i64, tpu.core_type = #tpu.core_type<tc>, window_params = [{transform_indices = @transform_0, window_bounds = array<i64: 1, 48, 16>}, {pipeline_mode = #tpu.pipeline_mode<synchronous>, transform_indices = @transform_1, window_bounds = array<i64: 16, 8>}, {pipeline_mode = #tpu.pipeline_mode<synchronous>, transform_indices = @transform_2, window_bounds = array<i64: 8, 48>}, {pipeline_mode = #tpu.pipeline_mode<synchronous>, transform_indices = @transform_3, window_bounds = array<i64: 8, 8>}, {pipeline_mode = #tpu.pipeline_mode<synchronous>, transform_indices = @transform_4, window_bounds = array<i64: 8, 8>}, {transform_indices = @transform_5, window_bounds = array<i64: 1, 8, 8>}]} {
    %c0 = arith.constant 0 : index
    %c0_0 = arith.constant 0 : index
    %c0_1 = arith.constant 0 : index
    %0 = vector.load %arg1[%c0, %c0_0, %c0_1] : memref<1x48x16xf32, #tpu.memory_space<vmem>>, vector<1x48x16xf32>
    %1 = vector.shape_cast %0 : vector<1x48x16xf32> to vector<48x16xf32>
    %c0_2 = arith.constant 0 : index
    %c0_3 = arith.constant 0 : index
    %2 = vector.load %arg2[%c0_2, %c0_3] : memref<16x8xf32, #tpu.memory_space<vmem>>, vector<16x8xf32>
    %c0_4 = arith.constant 0 : index
    %c0_5 = arith.constant 0 : index
    %3 = vector.load %arg3[%c0_4, %c0_5] : memref<8x48xf32, #tpu.memory_space<vmem>>, vector<8x48xf32>
    %c0_6 = arith.constant 0 : index
    %c0_7 = arith.constant 0 : index
    %4 = vector.load %arg4[%c0_6, %c0_7] : memref<8x8xf32, #tpu.memory_space<vmem>>, vector<8x8xf32>
    %c0_8 = arith.constant 0 : index
    %c0_9 = arith.constant 0 : index
    %5 = vector.load %arg5[%c0_8, %c0_9] : memref<8x8xf32, #tpu.memory_space<vmem>>, vector<8x8xf32>
    %cst = arith.constant dense<0.000000e+00> : vector<48x8xf32>
    %6 = tpu.matmul %1, %2, %cst {dimension_numbers = #tpu.dot_dimension_numbers<[1], [0], [0], [1], [0, 0, 1, 1], [], []>} : vector<48x16xf32>, vector<16x8xf32>, vector<48x8xf32> -> vector<48x8xf32>
    %cst_10 = arith.constant dense<0.000000e+00> : vector<8x8xf32>
    %7 = tpu.matmul %3, %6, %cst_10 {dimension_numbers = #tpu.dot_dimension_numbers<[1], [0], [0], [1], [0, 0, 1, 1], [], []>} : vector<8x48xf32>, vector<48x8xf32>, vector<8x8xf32> -> vector<8x8xf32>
    %cst_11 = arith.constant dense<0.000000e+00> : vector<8x8xf32>
    %8 = tpu.matmul %4, %7, %cst_11 {dimension_numbers = #tpu.dot_dimension_numbers<[1], [0], [0], [1], [0, 0, 1, 1], [], []>} : vector<8x8xf32>, vector<8x8xf32>, vector<8x8xf32> -> vector<8x8xf32>
    %cst_12 = arith.constant dense<0.000000e+00> : vector<8x8xf32>
    %9 = tpu.matmul %7, %5, %cst_12 {dimension_numbers = #tpu.dot_dimension_numbers<[1], [0], [0], [1], [0, 0, 1, 1], [], []>} : vector<8x8xf32>, vector<8x8xf32>, vector<8x8xf32> -> vector<8x8xf32>
    %10 = arith.addf %8, %9 : vector<8x8xf32>
    %c0_13 = arith.constant 0 : index
    %c0_14 = arith.constant 0 : index
    %c0_15 = arith.constant 0 : index
    %11 = vector.load %arg6[%c0_13, %c0_14, %c0_15] : memref<1x8x8xf32, #tpu.memory_space<vmem>>, vector<1x8x8xf32>
    %12 = vector.shape_cast %11 : vector<1x8x8xf32> to vector<8x8xf32>
    %13 = vector.shape_cast %10 : vector<8x8xf32> to vector<1x8x8xf32>
    tpu.vector_store %arg6[%c0_13, %c0_14, %c0_15], %13 {strides = array<i32>} : memref<1x8x8xf32, #tpu.memory_space<vmem>>, vector<1x8x8xf32>,
    return
  }
  func.func @transform_0(%arg0: i32) -> (i32, i32, i32) {
    %c0_i32 = arith.constant 0 : i32
    %c0_i32_0 = arith.constant 0 : i32
    %c0_i32_1 = arith.constant 0 : i32
    return %arg0, %c0_i32, %c0_i32_0 : i32, i32, i32
  }
  func.func @transform_1(%arg0: i32) -> (i32, i32) {
    %c0_i32 = arith.constant 0 : i32
    %c0_i32_0 = arith.constant 0 : i32
    %c0_i32_1 = arith.constant 0 : i32
    return %c0_i32, %c0_i32_0 : i32, i32
  }
  func.func @transform_2(%arg0: i32) -> (i32, i32) {
    %c0_i32 = arith.constant 0 : i32
    %c0_i32_0 = arith.constant 0 : i32
    %c0_i32_1 = arith.constant 0 : i32
    return %c0_i32, %c0_i32_0 : i32, i32
  }
  func.func @transform_3(%arg0: i32) -> (i32, i32) {
    %c0_i32 = arith.constant 0 : i32
    %c0_i32_0 = arith.constant 0 : i32
    %c0_i32_1 = arith.constant 0 : i32
    return %c0_i32, %c0_i32_0 : i32, i32
  }
  func.func @transform_4(%arg0: i32) -> (i32, i32) {
    %c0_i32 = arith.constant 0 : i32
    %c0_i32_0 = arith.constant 0 : i32
    %c0_i32_1 = arith.constant 0 : i32
    return %c0_i32, %c0_i32_0 : i32, i32
  }
  func.func @transform_5(%arg0: i32) -> (i32, i32, i32) {
    %c0_i32 = arith.constant 0 : i32
    %c0_i32_0 = arith.constant 0 : i32
    %c0_i32_1 = arith.constant 0 : i32
    return %arg0, %c0_i32, %c0_i32_0 : i32, i32, i32
  }
}

</mosaic_0001>

<bundles_post_ra>
// kernel: tpu_custom_call.1
= control target key start
LH: loop header
LB: loop body
LE: loop exit
PB: predicated region body
PF: predicated region fallthrough
CT: control target
= control target key end

     0   :  { %10 = vsyncpa [#allocation3], 0  ;;  %s695_s0 = inlined_call_operand.vmem [shape: f32[2,48,16], index: 0, kind: input, shape index: {}]   ;;  %s696_s1 = inlined_call_operand.vmem [shape: f32[16,8], index: 1, kind: input, shape index: {}]   ;;  %s697_s2 = inlined_call_operand.vmem [shape: f32[8,48], index: 2, kind: input, shape index: {}]   ;;  %s698_s3 = inlined_call_operand.vmem [shape: f32[8,8], index: 3, kind: input, shape index: {}]   ;;  %s699_s4 = inlined_call_operand.vmem [shape: f32[8,8], index: 4, kind: input, shape index: {}]   ;;  %s700_s5 = inlined_call_operand.hbm [shape: f32[2,8,8], index: 5, kind: output, shape index: {}]  }
   0x1   :  { %12 = vsyncpa [#allocation3 + $0x1], 0  ;;  %s592_s18 = smov 0   ;;  %s594_s19 = smov 0  }
   0x2   :  { %s596_s20 = smov 0   ;;  %s598_s21 = smov 0  }
   0x3 LB: > { %s613_s22 = sadd.s32 4294967295, %s560_s21   ;;  %s435_s23 = sadd.s32 4294967294, %s560_s21   ;;  %s560_s21 = sphi %s598_s21, %s706_s21   ;;  %s556_s20 = sphi %s596_s20, %s705_s20   ;;  %s552_s19 = sphi %s594_s19, %s704_s19   ;;  %s548_s18 = sphi %s592_s18, %s703_s18  }
   0x4   : > { %s617_s24 = sadd.s32 1, %s560_s21   ;;  %s135_s25 = sadd.s32 1, %s556_s20 }
   0x5   : > { %s132_s26 = ssub.s32 %s560_s21, %s617_s24  ;;  %p145_p0 = scmp.ne.s32.totalorder %s556_s20, %s552_s19 }
   0x6   : > { %p133_p1 = scmp.eq.s32.totalorder %s132_s26, 0  ;;  %p146_p2 = scmp.eq.s32.totalorder %s613_s22, 1 }
   0x7   : > { %p151_p3 = scmp.ne.s32.totalorder %s552_s19, %s548_s18  ;;  %p152_p4 = scmp.eq.s32.totalorder %s435_s23, 1 }
   0x8   : > { %s628_s27 = scalar_select %p133_p1, %s556_s20, %s135_s25  }
   0x9   : > { %p630_p5 = por %p146_p2, %p145_p0  ;;  %p634_p6 = por %p152_p4, %p151_p3 }
   0xa   : > { %p438_p7 = scmp.ge.s32.totalorder %s560_s21, 1  ;;  %p190_p8 = scmp.lt.s32.totalorder %s560_s21, 3 }
   0xc   : > { %p191_p9 = pnand %p438_p7, %p190_p8 }
   0xd   : > { %p218_p10 = scmp.lt.s32.totalorder (!%p191_p9), %s613_s22, 1  ;;  %s215_s26 = sand.u32 (!%p191_p9), 1, %s552_s19  }
   0xe   : > { %194 = sbr.rel (%p191_p9) target bundleno = 440 (0x1b8), region = 40  ;;  %s439_s30 = sshll.u32 (!%p191_p9), %s215_s26, 3 }
   0xf   : > { %s451_s6 = sshll.u32 (!%p191_p9), %s613_s22, 3  ;;  %s518_s17 = scalar_lea.hbm (!%p191_p9), %s700_s5, 16 }
  0x13   : > { %v230_v0 = vld [vmem:[%s696_s1 + $0x8] sm:$0xff]  ;;  %v229_v1 = vld [vmem:[%s696_s1] sm:$0xff]  ;;  %s219_s9 = scalar_select %p218_p10, %s613_s22, 1  ;;  %vm234_vm0 = vcmask 130048   ;;  %vm288_vm1 = vcmask 392192   ;;  %vm312_vm2 = vcmask 64512  }
  0x14   : > { %455 = vmatpush.msra.mxu3 %v230_v0  ;;  %267 = vmatpush.msra.mxu0 %v230_v0  ;;  %v231_v14 = vld [vmem:[%s697_s2] sm:$0xff] }
  0x15   : > { %454 = vmatpush.msra.mxu2 %v230_v0  ;;  %s458_s10 = smul.u32 48, %s219_s9  ;;  %v233_v15 = vld [vmem:[%s699_s4] sm:$0xff]  ;;  %s371_s9 = scalar_lea.hbm %s700_s5, %s451_s6 }
  0x16   : > { %457 = vmatpush.msra.mxu3 %v229_v1  ;;  %268 = vmatpush.msra.mxu0 %v229_v1  ;;  %v232_v16 = vld [vmem:[%s698_s3] sm:$0xff]  ;;  %s375_s12 = sshll.u32 %s371_s9, 4  ;;  %s376_s12 = int_to_ptr.hbm [resolvable:$true] %s375_s12 }
  0x17   : > { %456 = vmatpush.msra.mxu2 %v229_v1  ;;  %s222_s13 = scalar_lea.vmem %s695_s0, %s458_s10  ;;  %s217_s10 = scalar_lea.vmem [#allocation2], %s439_s30 }
  0x18   : > { %v227_v2 = vld [vmem:[%s222_s13 + $0x20] sm:$0xff]  ;;  %v226_v4 = vld [vmem:[%s222_s13 + $0x18] sm:$0xff]  ;;  %v228_v5 = vld [vmem:[%s222_s13 + $0x28] sm:$0xff]  ;;  %s373_s11 = sshll.u32 %s217_s10, 4  ;;  %s512_s14 = sshra.s32 %s376_s12, 4  ;;  %s374_s11 = int_to_ptr.vmem [resolvable:$true] %s373_s11  ;;  %s513_s14 = int_to_ptr.hbm [resolvable:$true] %s512_s14 }
  0x19   : > { %v223_v3 = vld [vmem:[%s222_s13] sm:$0xff]  ;;  %445 = vmatmul.msk.f32.vlgmr.msra.gmra.mxu3 %vm234_vm0, %v227_v2  ;;  %444 = vmatmul.msk.f32.vlgmr.msra.gmra.mxu2 %vm234_vm0, %v226_v4  ;;  %v224_v6 = vld [vmem:[%s222_s13 + $0x8] sm:$0xff]  ;;  %v225_v7 = vld [vmem:[%s222_s13 + $0x10] sm:$0xff]  ;;  %s361_s13 = scalar_lea.sflag [#allocation3], %s215_s26  ;;  %s514_s15 = scalar_lea.hbm %s513_s14, 8 }
  0x1a   : > { %441 = vmatmul.msk.f32.vlgmr.msra.gmra.mxu0 %vm234_vm0, %v223_v3  ;;  %331 = vmatpush.msrb.mxu2 %v233_v15  ;;  %p515_p11 = scmp.ne.s32.totalorder %s513_s14, %s514_s15  ;;  %p519_p0 = scmp.lt.s32.totalorder %s513_s14, %s700_s5 }
  0x1b   : > { %p520_p1 = scmp.lt.s32.totalorder %s518_s17, %s514_s15 }
  0x1c   : > { %p516_p12 = pnand %p515_p11, %p630_p5 }
  0x1d   : > { %p521_p2 = por %p520_p1, %p519_p0 }
  0x1e   : > { %p517_p13 = pneg %p516_p12 }
  0x20   : > { %p522_p3 = pnand %p521_p2, %p517_p13 }
  0x21   : > { %446 = vmatmul.msk.f32.gmra.mxu3 %vm234_vm0, %v228_v5 }
  0x22   : > { %442 = vmatmul.msk.f32.gmra.mxu0 %vm234_vm0, %v224_v6 }
  0x2a   : > { %443 = vmatmul.msk.f32.gmra.mxu0 %vm234_vm0, %v225_v7 }
  0x97   : > { %v270_v8 = vpop.f32.mrf.mxu0 }
  0x9c   : > { %v282_v9 = vpop.f32.mrf.mxu3  ;;  %v279_v12 = vpop.f32.mrf.mxu2 }
  0x9f   : > { %v273_v10 = vpop.f32.mrf.mxu0 }
  0xa4   : > { %v285_v11 = vpop.f32.mrf.mxu3 }
  0xa5   : > { %302 = vmatpush.msra.mxu1 %v285_v11 }
  0xa7   : > { %303 = vmatpush.msra.mxu1 %v282_v9  ;;  %v276_v13 = vpop.f32.mrf.mxu0 }
  0xa9   : > { %304 = vmatpush.msra.mxu1 %v279_v12 }
  0xab   : > { %305 = vmatpush.msra.mxu1 %v276_v13 }
  0xad   : > { %306 = vmatpush.msra.mxu1 %v273_v10 }
  0xaf   : > { %307 = vmatpush.msra.mxu1 %v270_v8 }
  0xb0   : > { %447 = vmatmul.msk.f32.vlgmr.msra.gmra.mxu1 %vm288_vm1, %v231_v14 }
 0x12d   : > { %v309_v17 = vpop.f32.mrf.mxu1 }
 0x12e   : > { %448 = vmatmul.msk.f32.vlgmr.msrb.gmra.mxu2 %vm312_vm2, %v309_v17  ;;  %354 = vmatpush.msrb.mxu3 %v309_v17 }
 0x12f   : > { %449 = vmatmul.msk.f32.vlgmr.msrb.gmra.mxu3 %vm312_vm2, %v232_v16 }
 0x1b1   : > { %v333_v18 = vpop.f32.mrf.mxu2 }
 0x1b2   : > { %v356_v19 = vpop.f32.mrf.mxu3 }
 0x1b3   : > { %v357_v20 = vadd.f32 %v356_v19, %v333_v18 }
 0x1b5   : > { %359 = vst.msk [vmem:[%s217_s10] sm:$0xff] %vm312_vm2, %v357_v20 }
 0x1b6   : > { %525 = shalt.err (!%p522_p3)
}
 0x1b7   : > { %459 = dma.vmem_to_hbm [thread:$0]  (%p630_p5), %s374_s11, 128, %s376_s12, %s361_s13  }
 0x1b8 PF: > { %p465_p4 = scmp.ge.s32.totalorder %s560_s21, 2  ;;  %s387_s26 = sand.u32 1, %s548_s18  }
 0x1b9   : > { %s388_s30 = scalar_lea.sflag [#allocation3], %s387_s26 }
 0x1ba   : > { %p462_p7 = pnand %p465_p4, %p634_p6 }
 0x1bc   : > { %p463_p8 = pneg %p462_p7 }
 0x1be   : > { %543 = dma.done.wait (%p463_p8), %s388_s30, 128  }
 0x1bf   : > { %545 = vsyncadd (%p463_p8), %s388_s30, 4294967168  ;;  %p15_p9 = scmp.ge.s32.totalorder %s617_s24, 4   ;;  %s703_s18 = smov %s552_s19 }
 0x1c0   : > { %s704_s19 = smov %s556_s20  ;;  %s705_s20 = smov %s628_s27 }
 0x1c1   : > { %s706_s21 = smov %s617_s24  ;;  %17 = sbr.rel (!%p15_p9) target bundleno = 3 (0x3), region = 75 }
 0x1c6   :  { %394 = vsyncpa [#allocation3], 1 }
 0x1c7   :  { %396 = vsyncpa [#allocation3 + $0x1], 1 }

</bundles_post_ra>
